<compile_context>
chip_gen: v6e
topology: v6e:2x2x1
jax: 0.10.0
libtpu: 0.0.40
codegen_flags: <defaults>
</compile_context>

<pallas_src>
import jax
import jax.numpy as jnp
from jax.experimental import pallas as pl
from jax.experimental.pallas import tpu as pltpu


def _round_up(x: int, m: int) -> int:
    return ((x + m - 1) // m) * m


def _gating_kernel(xl_ref, xr_ref, xs_ref, wl_ref, wr_ref, ws_ref, b_ref,
                   gl_ref, gr_ref):
    # Inputs are feature-major (d, TB): batch on lanes (dense), features on
    # sublanes.  Weight slabs are (d, 1) and broadcast along lanes.
    t = (
        jnp.sum(xl_ref[...].astype(jnp.float32) * wl_ref[...],
                axis=0, keepdims=True)
        + jnp.sum(xr_ref[...].astype(jnp.float32) * wr_ref[...],
                  axis=0, keepdims=True)
        + jnp.sum(xs_ref[...].astype(jnp.float32) * ws_ref[...],
                  axis=0, keepdims=True)
        + b_ref[0]
    )                                              # (1, TB), lane-dense
    gr = jax.nn.sigmoid(t)                         # softmax[..., 1] (single EUP pass)
    gr_ref[...] = gr.astype(gr_ref.dtype)
    gl_ref[...] = (1.0 - gr).astype(gl_ref.dtype)  # softmax[..., 0] (VPU)


def gating_network(state, left_latent, right_latent, weight, bias, *,
                   block_rows: int = 32768, xla_fallback_rows: int = 4096):
    """Pallas implementation of GatingNetwork.forward.

    state: (..., d_s), left_latent: (..., d_l), right_latent: (..., d_r)
    weight: (2, d_l + d_r + d_s)  [nn.Linear layout, concat order (l, r, s)]
    bias:   (2,)
    Returns (gate_left, gate_right), each (..., 1).
    """
    d_l = left_latent.shape[-1]
    d_r = right_latent.shape[-1]
    d_s = state.shape[-1]
    lead_shape = left_latent.shape[:-1]
    out_dtype = jnp.result_type(left_latent.dtype, right_latent.dtype,
                                state.dtype)

    b2 = 1
    for s in lead_shape:
        b2 *= int(s)

    if b2 < xla_fallback_rows:
        # Tiny batches: launch + single-step grid overhead dominates; XLA's
        # fused dot+softmax wins on every generation.
        inputs = jnp.concatenate(
            [left_latent.reshape(-1, d_l),
             right_latent.reshape(-1, d_r),
             state.reshape(-1, d_s)], axis=-1).astype(jnp.float32)
        logits = inputs @ weight.T.astype(jnp.float32) + bias.astype(jnp.float32)
        probs = jax.nn.softmax(logits, axis=-1).astype(out_dtype)
        return (probs[:, :1].reshape(*lead_shape, 1),
                probs[:, 1:].reshape(*lead_shape, 1))

    # Feature-major views: batch -> lanes.  (Wrapper-side transpose is layout
    # plumbing; the kernel then sees fully dense vregs and lane-dense stores.)
    xl = left_latent.reshape(-1, d_l).T            # (d_l, B)
    xr = right_latent.reshape(-1, d_r).T           # (d_r, B)
    xs = state.reshape(-1, d_s).T                  # (d_s, B)

    # Weight-difference slabs (z1 - z0 direction), split by concat segment.
    w_diff = (weight[1, :] - weight[0, :]).astype(jnp.float32)
    wd_l = w_diff[:d_l].reshape(d_l, 1)
    wd_r = w_diff[d_l:d_l + d_r].reshape(d_r, 1)
    wd_s = w_diff[d_l + d_r:].reshape(d_s, 1)
    b_diff = (bias[1] - bias[0]).astype(jnp.float32).reshape(1)

    # --- Tile sizing (generation aware) --------------------------------------
    il = jnp.dtype(left_latent.dtype).itemsize
    ir = jnp.dtype(right_latent.dtype).itemsize
    isz = jnp.dtype(state.dtype).itemsize
    ob = jnp.dtype(out_dtype).itemsize
    # Double-buffered per-row VMEM cost: three input tiles + two (sublane
    # padded to 8) output rows.
    per_row = 2 * (d_l * il + d_r * ir + d_s * isz + 2 * 8 * ob)
    vmem_budget = 28 * 1024 * 1024        # safe on v7x (64 MiB VMEM) and below
    max_rows = max(128, (vmem_budget // per_row) // 128 * 128)
    block_rows = min(block_rows, max_rows)

    n_blocks = pl.cdiv(b2, block_rows)
    if n_blocks < 2 and b2 > 256:
        n_blocks = 2                      # >=2 grid steps so v7x uses both TCs
    block_b = min(_round_up(pl.cdiv(b2, n_blocks), 128), _round_up(b2, 128))
    grid = (pl.cdiv(b2, block_b),)

    vmem_limit = int(min(max(3 * per_row * block_b // 2, 8 * 1024 * 1024),
                         30 * 1024 * 1024))

    # TODO(synk): weight slabs have constant index_maps; pipeline_mode=
    # pl.Buffered(1) would skip their double-buffering (tiny VMEM saving).
    gate_l, gate_r = pl.pallas_call(
        _gating_kernel,
        out_shape=(jax.ShapeDtypeStruct((1, b2), out_dtype),
                   jax.ShapeDtypeStruct((1, b2), out_dtype)),
        grid=grid,
        in_specs=[
            pl.BlockSpec((d_l, block_b), lambda i: (0, i)),
            pl.BlockSpec((d_r, block_b), lambda i: (0, i)),
            pl.BlockSpec((d_s, block_b), lambda i: (0, i)),
            pl.BlockSpec((d_l, 1), lambda i: (0, 0)),   # resident weight slabs
            pl.BlockSpec((d_r, 1), lambda i: (0, 0)),
            pl.BlockSpec((d_s, 1), lambda i: (0, 0)),
            pl.BlockSpec(memory_space=pltpu.MemorySpace.SMEM),  # scalar bias diff
        ],
        out_specs=(
            pl.BlockSpec((1, block_b), lambda i: (0, i)),
            pl.BlockSpec((1, block_b), lambda i: (0, i)),
        ),
        compiler_params=pltpu.CompilerParams(
            dimension_semantics=("parallel",),
            vmem_limit_bytes=vmem_limit),
    )(xl, xr, xs, wd_l, wd_r, wd_s, b_diff)

    return (gate_l.reshape(*lead_shape, 1),
            gate_r.reshape(*lead_shape, 1))


if __name__ == "__main__":
    key = jax.random.PRNGKey(0)
    k1, k2, k3, k4, k5 = jax.random.split(key, 5)

    # Shapes consistent with the module: latent dim 8, state dim 16 -> D=32.
    batch = 8
    d_latent = 8
    d_state = 16
    input_dims = 2 * d_latent + d_state

    state = jax.random.normal(k1, (batch, d_state), dtype=jnp.float32)
    left_latent = jax.random.normal(k2, (batch, d_latent), dtype=jnp.float32)
    right_latent = jax.random.normal(k3, (batch, d_latent), dtype=jnp.float32)

    bound = float(1.0 / (input_dims ** 0.5))
    weight = jax.random.uniform(k4, (2, input_dims), minval=-bound,
                                maxval=bound, dtype=jnp.float32)
    bias = jax.random.uniform(k5, (2,), minval=-bound, maxval=bound,
                              dtype=jnp.float32)

    def reference(st, ll, rl):
        inputs = jnp.concatenate([ll, rl, st], axis=-1)
        probs = jax.nn.softmax(inputs @ weight.T + bias, axis=-1)
        return probs[..., :1], probs[..., 1:]

    # 1) Tiny batch -> plain-XLA fallback path.
    gl, gr = gating_network(state, left_latent, right_latent, weight, bias)
    jax.block_until_ready((gl, gr))
    rl_ref, rr_ref = reference(state, left_latent, right_latent)
    assert gl.shape == (batch, 1) and gr.shape == (batch, 1)
    assert jnp.allclose(gl, rl_ref, atol=1e-5)
    assert jnp.allclose(gr, rr_ref, atol=1e-5)

    # 2) Force the Pallas kernel on a small, non-128-multiple batch:
    #    exercises the multi-step grid and the padded last lane block.
    kb = jax.random.split(k1, 3)
    small_b = 200
    st_s = jax.random.normal(kb[0], (small_b, d_state), dtype=jnp.float32)
    ll_s = jax.random.normal(kb[1], (small_b, d_latent), dtype=jnp.float32)
    rl_s = jax.random.normal(kb[2], (small_b, d_latent), dtype=jnp.float32)
    gl_s, gr_s = gating_network(st_s, ll_s, rl_s, weight, bias,
                                block_rows=128, xla_fallback_rows=0)
    jax.block_until_ready((gl_s, gr_s))
    rls, rrs = reference(st_s, ll_s, rl_s)
    assert jnp.allclose(gl_s, rls, atol=1e-5)
    assert jnp.allclose(gr_s, rrs, atol=1e-5)

    # 3) Larger batch through the default Pallas path (>= 2 grid steps).
    kc = jax.random.split(k2, 3)
    big_b = 4609
    st_b = jax.random.normal(kc[0], (big_b, d_state), dtype=jnp.float32)
    ll_b = jax.random.normal(kc[1], (big_b, d_latent), dtype=jnp.float32)
    rl_b = jax.random.normal(kc[2], (big_b, d_latent), dtype=jnp.float32)
    gl_b, gr_b = gating_network(st_b, ll_b, rl_b, weight, bias)
    jax.block_until_ready((gl_b, gr_b))
    rlb, rrb = reference(st_b, ll_b, rl_b)
    assert gl_b.shape == (big_b, 1) and gr_b.shape == (big_b, 1)
    assert jnp.allclose(gl_b, rlb, atol=1e-5)
    assert jnp.allclose(gr_b, rrb, atol=1e-5)

    print("KERNEL_OK")
</pallas_src>

<mosaic_0001>
module attributes {stable_mosaic.version = 11 : i64} {
  func.func @_gating_kernel(%arg0: i32, %arg1: memref<8x128xf32, #tpu.memory_space<vmem>>, %arg2: memref<8x128xf32, #tpu.memory_space<vmem>>, %arg3: memref<16x128xf32, #tpu.memory_space<vmem>>, %arg4: memref<8x1xf32, #tpu.memory_space<vmem>>, %arg5: memref<8x1xf32, #tpu.memory_space<vmem>>, %arg6: memref<16x1xf32, #tpu.memory_space<vmem>>, %arg7: memref<1xf32, #tpu.memory_space<smem>>, %arg8: memref<1x128xf32, #tpu.memory_space<vmem>>, %arg9: memref<1x128xf32, #tpu.memory_space<vmem>>) attributes {dimension_semantics = [#tpu.dimension_semantics<parallel>], iteration_bounds = array<i64: 2>, scalar_prefetch = 0 : i64, scratch_operands = 0 : i64, tpu.core_type = #tpu.core_type<tc>, window_params = [{transform_indices = @transform_0, window_bounds = array<i64: 8, 128>}, {transform_indices = @transform_1, window_bounds = array<i64: 8, 128>}, {transform_indices = @transform_2, window_bounds = array<i64: 16, 128>}, {pipeline_mode = #tpu.pipeline_mode<synchronous>, transform_indices = @transform_3, window_bounds = array<i64: 8, 1>}, {pipeline_mode = #tpu.pipeline_mode<synchronous>, transform_indices = @transform_4, window_bounds = array<i64: 8, 1>}, {pipeline_mode = #tpu.pipeline_mode<synchronous>, transform_indices = @transform_5, window_bounds = array<i64: 16, 1>}, {transform_indices = @transform_6, window_bounds = array<i64: 1>}, {transform_indices = @transform_7, window_bounds = array<i64: 1, 128>}, {transform_indices = @transform_8, window_bounds = array<i64: 1, 128>}]} {
    %c0 = arith.constant 0 : index
    %c0_0 = arith.constant 0 : index
    %0 = vector.load %arg1[%c0, %c0_0] : memref<8x128xf32, #tpu.memory_space<vmem>>, vector<8x128xf32>
    %c0_1 = arith.constant 0 : index
    %c0_2 = arith.constant 0 : index
    %1 = vector.load %arg4[%c0_1, %c0_2] : memref<8x1xf32, #tpu.memory_space<vmem>>, vector<8x1xf32>
    %2 = vector.broadcast %1 : vector<8x1xf32> to vector<8x128xf32>
    %3 = arith.mulf %0, %2 : vector<8x128xf32>
    %cst = arith.constant dense<0.000000e+00> : vector<128xf32>
    %4 = vector.multi_reduction <add>, %3, %cst [0] : vector<8x128xf32> to vector<128xf32>
    %5 = vector.shape_cast %4 : vector<128xf32> to vector<1x128xf32>
    %c0_3 = arith.constant 0 : index
    %c0_4 = arith.constant 0 : index
    %6 = vector.load %arg2[%c0_3, %c0_4] : memref<8x128xf32, #tpu.memory_space<vmem>>, vector<8x128xf32>
    %c0_5 = arith.constant 0 : index
    %c0_6 = arith.constant 0 : index
    %7 = vector.load %arg5[%c0_5, %c0_6] : memref<8x1xf32, #tpu.memory_space<vmem>>, vector<8x1xf32>
    %8 = vector.broadcast %7 : vector<8x1xf32> to vector<8x128xf32>
    %9 = arith.mulf %6, %8 : vector<8x128xf32>
    %cst_7 = arith.constant dense<0.000000e+00> : vector<128xf32>
    %10 = vector.multi_reduction <add>, %9, %cst_7 [0] : vector<8x128xf32> to vector<128xf32>
    %11 = vector.shape_cast %10 : vector<128xf32> to vector<1x128xf32>
    %12 = arith.addf %5, %11 : vector<1x128xf32>
    %c0_8 = arith.constant 0 : index
    %c0_9 = arith.constant 0 : index
    %13 = vector.load %arg3[%c0_8, %c0_9] : memref<16x128xf32, #tpu.memory_space<vmem>>, vector<16x128xf32>
    %c0_10 = arith.constant 0 : index
    %c0_11 = arith.constant 0 : index
    %14 = vector.load %arg6[%c0_10, %c0_11] : memref<16x1xf32, #tpu.memory_space<vmem>>, vector<16x1xf32>
    %15 = vector.broadcast %14 : vector<16x1xf32> to vector<16x128xf32>
    %16 = arith.mulf %13, %15 : vector<16x128xf32>
    %cst_12 = arith.constant dense<0.000000e+00> : vector<128xf32>
    %17 = vector.multi_reduction <add>, %16, %cst_12 [0] : vector<16x128xf32> to vector<128xf32>
    %18 = vector.shape_cast %17 : vector<128xf32> to vector<1x128xf32>
    %19 = arith.addf %12, %18 : vector<1x128xf32>
    %c0_13 = arith.constant 0 : index
    %20 = memref.load %arg7[%c0_13] : memref<1xf32, #tpu.memory_space<smem>>
    %21 = vector.broadcast %20 : f32 to vector<1x128xf32>
    %22 = arith.addf %19, %21 : vector<1x128xf32>
    %23 = arith.negf %22 : vector<1x128xf32>
    %24 = math.exp %23 : vector<1x128xf32>
    %cst_14 = arith.constant 1.000000e+00 : f32
    %25 = vector.broadcast %cst_14 : f32 to vector<1x128xf32>
    %26 = arith.addf %25, %24 : vector<1x128xf32>
    %27 = arith.divf %25, %26 : vector<1x128xf32>
    %c0_15 = arith.constant 0 : index
    %c0_16 = arith.constant 0 : index
    %28 = vector.load %arg9[%c0_15, %c0_16] : memref<1x128xf32, #tpu.memory_space<vmem>>, vector<1x128xf32>
    tpu.vector_store %arg9[%c0_15, %c0_16], %27 {strides = array<i32>} : memref<1x128xf32, #tpu.memory_space<vmem>>, vector<1x128xf32>,
    %cst_17 = arith.constant 1.000000e+00 : f32
    %29 = vector.broadcast %cst_17 : f32 to vector<1x128xf32>
    %30 = arith.subf %29, %27 : vector<1x128xf32>
    %c0_18 = arith.constant 0 : index
    %c0_19 = arith.constant 0 : index
    %31 = vector.load %arg8[%c0_18, %c0_19] : memref<1x128xf32, #tpu.memory_space<vmem>>, vector<1x128xf32>
    tpu.vector_store %arg8[%c0_18, %c0_19], %30 {strides = array<i32>} : memref<1x128xf32, #tpu.memory_space<vmem>>, vector<1x128xf32>,
    return
  }
  func.func @transform_0(%arg0: i32) -> (i32, i32) {
    %c0_i32 = arith.constant 0 : i32
    %c0_i32_0 = arith.constant 0 : i32
    return %c0_i32, %arg0 : i32, i32
  }
  func.func @transform_1(%arg0: i32) -> (i32, i32) {
    %c0_i32 = arith.constant 0 : i32
    %c0_i32_0 = arith.constant 0 : i32
    return %c0_i32, %arg0 : i32, i32
  }
  func.func @transform_2(%arg0: i32) -> (i32, i32) {
    %c0_i32 = arith.constant 0 : i32
    %c0_i32_0 = arith.constant 0 : i32
    return %c0_i32, %arg0 : i32, i32
  }
  func.func @transform_3(%arg0: i32) -> (i32, i32) {
    %c0_i32 = arith.constant 0 : i32
    %c0_i32_0 = arith.constant 0 : i32
    %c0_i32_1 = arith.constant 0 : i32
    return %c0_i32, %c0_i32_0 : i32, i32
  }
  func.func @transform_4(%arg0: i32) -> (i32, i32) {
    %c0_i32 = arith.constant 0 : i32
    %c0_i32_0 = arith.constant 0 : i32
    %c0_i32_1 = arith.constant 0 : i32
    return %c0_i32, %c0_i32_0 : i32, i32
  }
  func.func @transform_5(%arg0: i32) -> (i32, i32) {
    %c0_i32 = arith.constant 0 : i32
    %c0_i32_0 = arith.constant 0 : i32
    %c0_i32_1 = arith.constant 0 : i32
    return %c0_i32, %c0_i32_0 : i32, i32
  }
  func.func @transform_6(%arg0: i32) -> i32 {
    %c0_i32 = arith.constant 0 : i32
    %c0_i32_0 = arith.constant 0 : i32
    return %c0_i32 : i32
  }
  func.func @transform_7(%arg0: i32) -> (i32, i32) {
    %c0_i32 = arith.constant 0 : i32
    %c0_i32_0 = arith.constant 0 : i32
    return %c0_i32, %arg0 : i32, i32
  }
  func.func @transform_8(%arg0: i32) -> (i32, i32) {
    %c0_i32 = arith.constant 0 : i32
    %c0_i32_0 = arith.constant 0 : i32
    return %c0_i32, %arg0 : i32, i32
  }
}

</mosaic_0001>

<bundles_post_ra>
// kernel: tpu_custom_call.1
= control target key start
LH: loop header
LB: loop body
LE: loop exit
PB: predicated region body
PF: predicated region fallthrough
CT: control target
= control target key end

     0   :  { %s1168_s0 = inlined_call_operand.hbm [shape: f32[8,200], index: 0, kind: input, shape index: {}]   ;;  %s1169_s1 = inlined_call_operand.hbm [shape: f32[8,200], index: 1, kind: input, shape index: {}]   ;;  %s1170_s2 = inlined_call_operand.vmem [shape: f32[16,200], index: 2, kind: input, shape index: {}]   ;;  %s1171_s3 = inlined_call_operand.vmem [shape: f32[8,1], index: 3, kind: input, shape index: {}]   ;;  %s1172_s4 = inlined_call_operand.vmem [shape: f32[8,1], index: 4, kind: input, shape index: {}]   ;;  %s1173_s5 = inlined_call_operand.vmem [shape: f32[16,1], index: 5, kind: input, shape index: {}]   ;;  %s1174_s6 = inlined_call_operand.<no memory space> [shape: f32[1], index: 6, kind: input, shape index: {}]   ;;  %s1175_s7 = inlined_call_operand.hbm [shape: f32[1,200], index: 7, kind: output, shape index: {0}]   ;;  %s1176_s8 = inlined_call_operand.hbm [shape: f32[1,200], index: 8, kind: output, shape index: {1}]  }
   0x1   :  { %14 = sst [smem:[#allocation2]] %s1174_s6 }
   0x2   :  { %15 = vsyncpa [#allocation4], 0 }
   0x3   :  { %17 = vsyncpa [#allocation4 + $0x1], 0 }
   0x4   :  { %18 = vsyncpa [#allocation7], 0 }
   0x5   :  { %20 = vsyncpa [#allocation7 + $0x1], 0 }
   0x6   :  { %21 = vsyncpa [#allocation5], 0 }
   0x7   :  { %23 = vsyncpa [#allocation5 + $0x1], 0 }
   0x8   :  { %24 = vsyncpa [#allocation11], 0 }
   0x9   :  { %26 = vsyncpa [#allocation11 + $0x1], 0  ;;  %s935_s29 = smov 0   ;;  %s937_s30 = smov 0  }
   0xa   :  { %s939_s9 = smov 0   ;;  %s941_s10 = smov 0  }
   0xb LB: > { %1182 = sst [smem:[#allocation16_spill]] %s876_s9  ;;  %s956_s6 = sadd.s32 4294967295, %s880_s10   ;;  %s880_s10 = sphi %s941_s10, %s1197_s10   ;;  %s876_s9 = sphi %s939_s9, %s1194_s9   ;;  %s872_s30 = sphi %s937_s30, %s1196_s30   ;;  %s868_s29 = sphi %s935_s29, %s1195_s29  }
   0xc   : > { %s657_s11 = sadd.s32 4294967294, %s880_s10   ;;  %s960_s12 = sadd.s32 1, %s880_s10  }
   0xd   : > { %s39_s13 = sadd.s32 1, %s876_s9  ;;  %s36_s14 = ssub.s32 %s880_s10, %s960_s12 }
   0xe   : > { %p46_p0 = scmp.ne.s32.totalorder %s876_s9, %s872_s30  ;;  %p37_p1 = scmp.eq.s32.totalorder %s36_s14, 0 }
   0xf   : > { %p47_p2 = scmp.eq.s32.totalorder %s880_s10, 0  ;;  %p52_p3 = scmp.ne.s32.totalorder %s872_s30, %s868_s29 }
  0x10   : > { %p53_p4 = scmp.eq.s32.totalorder %s956_s6, 0  ;;  %p212_p7 = scmp.eq.s32.totalorder %s956_s6, 1 }
  0x11   : > { %s972_s15 = scalar_select %p37_p1, %s876_s9, %s39_s13  }
  0x12   : > { %p974_p5 = por %p47_p2, %p46_p0  ;;  %p978_p6 = por %p53_p4, %p52_p3 }
  0x13   : > { %1183 = sst [smem:[#allocation17_spill]] %s972_s15  ;;  %p218_p8 = scmp.eq.s32.totalorder %s657_s11, 1 }
  0x14   : > { %p983_p9 = por %p212_p7, %p46_p0  ;;  %p1177_p11 = scmp.ge.s32.totalorder %s880_s10, 2 }
  0x15   : > { %p987_p10 = por %p218_p8, %p52_p3  ;;  %s995_s20 = sand.u32 (!%p1177_p11), 1, %s876_s9  }
  0x16   : > { %s1186_s18 = scalar_select %p983_p9, 1, 0 }
  0x17   : > { %s1187_s19 = scalar_select %p987_p10, 1, 0 }
  0x18   : > { %272 = sbr.rel (%p1177_p11) target bundleno = 77 (0x4d), region = 32  ;;  %s1179_s21 = sshll.u32 (!%p1177_p11), %s880_s10, 7 }
  0x19   : > { %s1178_s22 = sshll.u32 (!%p1177_p11), %s995_s20, 3  ;;  %s1004_s25 = scalar_lea.hbm (!%p1177_p11), %s1168_s0, %s1179_s21 }
  0x1a   : > { %s280_s26 = scalar_lea.vmem (!%p1177_p11), [#allocation3], %s1178_s22  ;;  %s277_s28 = scalar_lea.sflag (!%p1177_p11), [#allocation4], %s995_s20 }
  0x1b   : > { %s287_s27 = sshll.u32 (!%p1177_p11), %s280_s26, 4  ;;  %s730_s11 = scalar_lea.hbm (!%p1177_p11), %s1004_s25, 128  ;;  %s288_s27 = int_to_ptr.vmem [resolvable:$true] %s287_s27 }
  0x1c   : > { %p731_p12 = scmp.ne.s32.totalorder (!%p1177_p11), %s1004_s25, %s730_s11  ;;  %s734_s15 = scalar_lea.hbm (!%p1177_p11), %s1168_s0, 256 }
  0x1d   : > { %p735_p1 = scmp.lt.s32.totalorder %s1004_s25, %s1168_s0  ;;  %p736_p2 = scmp.lt.s32.totalorder %s734_s15, %s730_s11 }
  0x1e   : > { %p732_p13 = pnand %p731_p12, %p974_p5 }
  0x1f   : > { %p737_p3 = por %p736_p2, %p735_p1 }
  0x20   : > { %p733_p0 = pneg %p732_p13 }
  0x22   : > { %p738_p4 = pnand %p737_p3, %p733_p0 }
  0x24   : > { %741 = shalt.err (!%p738_p4)
}
  0x25   : > { %s742_s26 = scalar_lea.vmem %s288_s27, 128  ;;  %s882_s22 = smov [#allocation3]  }
  0x26   : > { %p743_p7 = scmp.ne.s32.totalorder %s288_s27, %s742_s26  ;;  %s746_s21 = sshll.u32 %s882_s22, 4  ;;  %s747_s21 = int_to_ptr.vmem [resolvable:$false] %s746_s21 }
  0x27   : > { %s748_s9 = scalar_lea.vmem %s747_s21, 256  ;;  %p749_p12 = scmp.lt.s32.totalorder %s288_s27, %s747_s21 }
  0x28   : > { %p744_p8 = pnand %p743_p7, %p974_p5  ;;  %p750_p13 = scmp.lt.s32.totalorder %s748_s9, %s742_s26 }
  0x2a   : > { %p745_p11 = pneg %p744_p8  ;;  %p751_p10 = por %p750_p13, %p749_p12 }
  0x2c   : > { %p752_p9 = pnand %p751_p10, %p745_p11 }
  0x2e   : > { %755 = shalt.err (!%p752_p9)
}
  0x2f   : > { %675 = dma.hbm_to_vmem [thread:$0]  (%p974_p5), %s1004_s25, 128, %s288_s27, %s277_s28  }
  0x30   : > { %s1188_s15 = sshll.u32 %s880_s10, 7  ;;  %s1189_s14 = sshll.u32 %s995_s20, 3 }
  0x31   : > { %s1030_s22 = scalar_lea.hbm %s1169_s1, %s1188_s15  ;;  %s298_s9 = scalar_lea.vmem [#allocation6], %s1189_s14 }
  0x32   : > { %s305_s21 = sshll.u32 %s298_s9, 4  ;;  %s295_s23 = scalar_lea.sflag [#allocation7], %s995_s20  ;;  %s306_s21 = int_to_ptr.vmem [resolvable:$true] %s305_s21 }
  0x33   : > { %s756_s24 = scalar_lea.hbm %s1030_s22, 128  ;;  %s760_s28 = scalar_lea.hbm %s1169_s1, 256 }
  0x34   : > { %p757_p9 = scmp.ne.s32.totalorder %s1030_s22, %s756_s24  ;;  %p761_p0 = scmp.lt.s32.totalorder %s1030_s22, %s1169_s1 }
  0x35   : > { %p762_p1 = scmp.lt.s32.totalorder %s760_s28, %s756_s24 }
  0x36   : > { %p758_p10 = pnand %p757_p9, %p974_p5 }
  0x37   : > { %p763_p2 = por %p762_p1, %p761_p0 }
  0x38   : > { %p759_p11 = pneg %p758_p10 }
  0x3a   : > { %p764_p3 = pnand %p763_p2, %p759_p11 }
  0x3c   : > { %767 = shalt.err (!%p764_p3)
}
  0x3d   : > { %s768_s11 = scalar_lea.vmem %s306_s21, 128  ;;  %s883_s13 = smov [#allocation6]  }
  0x3e   : > { %p769_p4 = scmp.ne.s32.totalorder %s306_s21, %s768_s11  ;;  %s772_s14 = sshll.u32 %s883_s13, 4  ;;  %s773_s14 = int_to_ptr.vmem [resolvable:$false] %s772_s14 }
  0x3f   : > { %s774_s9 = scalar_lea.vmem %s773_s14, 256  ;;  %p775_p12 = scmp.lt.s32.totalorder %s306_s21, %s773_s14 }
  0x40   : > { %p770_p7 = pnand %p769_p4, %p974_p5  ;;  %p776_p13 = scmp.lt.s32.totalorder %s774_s9, %s768_s11 }
  0x42   : > { %p771_p8 = pneg %p770_p7  ;;  %p777_p9 = por %p776_p13, %p775_p12 }
  0x44   : > { %p778_p10 = pnand %p777_p9, %p771_p8 }
  0x46   : > { %781 = shalt.err (!%p778_p10)
}
  0x47   : > { %676 = dma.hbm_to_vmem [thread:$0]  (%p974_p5), %s1030_s22, 128, %s306_s21, %s295_s23  }
  0x48   : > { %311 = sbr.rel (!%p974_p5) target bundleno = 77 (0x4d), region = 44  ;;  %s664_s24 = sshll.u32 (%p974_p5), %s995_s20, 4 }
  0x49   : > { %s665_s25 = sshll.u32 (%p974_p5), %s880_s10, 3  ;;  %s315_s15 = scalar_lea.vmem (%p974_p5), [#allocation8], %s664_s24 }
  0x4a   : > { %s317_s26 = scalar_lea.vmem (%p974_p5), %s1170_s2, %s665_s25 }
  0x4b   : > { %v348_v0 = vld [vmem:[%s317_s26] sm:$0xff] (%p974_p5)  ;;  %v350_v1 = vld [vmem:[%s317_s26 + $0x10] sm:$0xff] (%p974_p5) }
  0x4c   : > { %349 = vst [vmem:[%s315_s15] sm:$0xff] (%p974_p5), %v348_v0  ;;  %351 = vst [vmem:[%s315_s15 + $0x8] sm:$0xff] (%p974_p5), %v350_v1 }
  0x4d PF: > { %p666_p11 = scmp.ge.s32.totalorder %s880_s10, 1  ;;  %p356_p0 = scmp.lt.s32.totalorder %s880_s10, 3 }
  0x4f   : > { %p357_p5 = pnand %p666_p11, %p356_p0 }
  0x50   : > { %s1061_s16 = sand.u32 (!%p357_p5), 1, %s872_s30  }
  0x51   : > { %360 = sbr.rel (%p357_p5) target bundleno = 306 (0x132), region = 82  ;;  %s667_s20 = sshll.u32 (!%p357_p5), %s1061_s16, 3 }
  0x52   : > { %s363_s22 = scalar_lea.sflag (!%p357_p5), [#allocation4], %s1061_s16  ;;  %s366_s21 = scalar_lea.vmem (!%p357_p5), [#allocation3], %s667_s20 }
  0x56   : > { %851 = dma.done.wait (%p978_p6), %s363_s22, 128  }
  0x57   : > { %853 = vsyncadd (%p978_p6), %s363_s22, 4294967168  ;;  %s372_s23 = scalar_lea.sflag [#allocation7], %s1061_s16  ;;  %s375_s11 = scalar_lea.vmem [#allocation6], %s667_s20 }
  0x58   : > { %855 = dma.done.wait (%p978_p6), %s372_s23, 128  }
  0x59   : > { %857 = vsyncadd (%p978_p6), %s372_s23, 4294967168  ;;  %v884_v2 = vmov 0   ;;  %v458_v3 = vld [vmem:[%s1173_s5] sm:$0xff]  ;;  %v459_v5 = vld [vmem:[%s1173_s5 + $0x8] sm:$0xff]  ;;  %s669_s26 = sshll.u32 %s1061_s16, 4  ;;  %s480_s20 = sld [smem:[#allocation2]] }
  0x5a   : > { %725 = vset.pattern.permute.xlu1 %v884_v2  ;;  %724 = vset.pattern.permute.xlu0 %v884_v2  ;;  %v428_v4 = vld [vmem:[%s1171_s3] sm:$0xff]  ;;  %s383_s15 = scalar_lea.vmem [#allocation8], %s669_s26  ;;  %v441_v13 = vld [vmem:[%s375_s11] sm:$0xff]  ;;  %s671_s22 = sshll.u32 %s956_s6, 4 }
  0x5b   : > { %462 = vperm.xlu1 %725, %v458_v3   ;;  %431 = vperm.xlu0 %724, %v428_v4   ;;  %v442_v6 = vld [vmem:[%s1172_s4] sm:$0xff]  ;;  %v457_v12 = vld [vmem:[%s383_s15 + $0x8] sm:$0xff]  ;;  %s420_s11 = scalar_lea.vmem [#allocation9], %s1061_s16  ;;  %s1095_s24 = scalar_lea.hbm %s1176_s8, %s671_s22 }
  0x5c   : > { %v427_v7 = vld [vmem:[%s366_s21] sm:$0xff]  ;;  %s426_s21 = scalar_lea.vmem [#allocation10], %s1061_s16  ;;  %s509_s13 = sshll.u32 %s420_s11, 4  ;;  %s1104_s13 = int_to_ptr.vmem [resolvable:$true] %s509_s13 }
  0x5d   : > { %v456_v11 = vld [vmem:[%s383_s15] sm:$0xff]  ;;  %s522_s23 = sshll.u32 %s426_s21, 4  ;;  %s1102_s6 = scalar_lea.hbm %s1175_s7, %s671_s22  ;;  %s1097_s23 = int_to_ptr.vmem [resolvable:$true] %s522_s23 }
  0x5e   : > { %s497_s17 = scalar_lea.sflag [#allocation11], %s1061_s16  ;;  %s782_s28 = scalar_lea.vmem %s1097_s23, 16 }
  0x5f   : > { %467 = vperm.xlu1 %725, %v459_v5   ;;  %445 = vperm.xlu0 %724, %v442_v6   ;;  %v481_v39 = vstv %s480_s20  ;;  %p783_p6 = scmp.ne.s32.totalorder %s1097_s23, %s782_s28  ;;  %p1190_p1 = scmp.ne.s32.totalorder %s1186_s18, 0 }
  0x60   : > { %s885_s26 = smov [#allocation10]  }
  0x61   : > { %p784_p2 = pnand %p783_p6, %p1190_p1  ;;  %s786_s15 = sshll.u32 %s885_s26, 4  ;;  %s787_s15 = int_to_ptr.vmem [resolvable:$false] %s786_s15 }
  0x62   : > { %s788_s20 = scalar_lea.vmem %s787_s15, 32  ;;  %p789_p4 = scmp.lt.s32.totalorder %s1097_s23, %s787_s15 }
  0x63   : > { %p785_p3 = pneg %p784_p2  ;;  %p790_p7 = scmp.lt.s32.totalorder %s788_s20, %s782_s28 }
  0x65   : > { %p791_p8 = por %p790_p7, %p789_p4 }
  0x67   : > { %p792_p12 = pnand %p791_p8, %p785_p3 }
  0xd6   : > { %v463_v8 = vpop.permute.xlu1 %462  ;;  %v432_v9 = vpop.permute.xlu0 %431 }
  0xd7   : > { %v434_v10 = vmul.f32 %v432_v9, %v427_v7  ;;  %v470_v17 = vmul.f32 %v463_v8, %v456_v11 }
  0xd9   : > { %v435_v14 = vrot.slane %v434_v10, 4 }
  0xda   : > { %v468_v15 = vpop.permute.xlu1 %467  ;;  %v446_v16 = vpop.permute.xlu0 %445 }
  0xdb   : > { %v436_v18 = vadd.f32 %v435_v14, %v434_v10  ;;  %v471_v19 = vmul.f32 %v468_v15, %v457_v12  ;;  %v448_v20 = vmul.f32 %v446_v16, %v441_v13 }
  0xdd   : > { %v437_v21 = vrot.slane %v436_v18, 2  ;;  %v472_v22 = vadd.f32 %v471_v19, %v470_v17  ;;  %v449_v23 = vrot.slane %v448_v20, 4 }
  0xdf   : > { %v438_v24 = vadd.f32 %v437_v21, %v436_v18  ;;  %v473_v25 = vrot.slane %v472_v22, 4  ;;  %v450_v26 = vadd.f32 %v449_v23, %v448_v20 }
  0xe1   : > { %v474_v27 = vadd.f32 %v473_v25, %v472_v22  ;;  %v451_v28 = vrot.slane %v450_v26, 2  ;;  %v439_v29 = vrot.slane %v438_v24, 1 }
  0xe3   : > { %v475_v30 = vrot.slane %v474_v27, 2  ;;  %v452_v31 = vadd.f32 %v451_v28, %v450_v26  ;;  %v440_v34 = vadd.f32 %v439_v29, %v438_v24 }
  0xe5   : > { %v476_v32 = vadd.f32 %v475_v30, %v474_v27  ;;  %v453_v33 = vrot.slane %v452_v31, 1 }
  0xe7   : > { %v477_v35 = vrot.slane %v476_v32, 1  ;;  %v454_v36 = vadd.f32 %v453_v33, %v452_v31 }
  0xe9   : > { %v478_v37 = vadd.f32 %v477_v35, %v476_v32  ;;  %v455_v38 = vadd.f32 %v454_v36, %v440_v34 }
  0xeb   : > { %v479_v40 = vadd.f32 %v478_v37, %v455_v38 }
  0xed   : > { %v482_v41 = vadd.f32 %v481_v39, %v479_v40 }
  0xef   : > { %v670_v42 = vmul.f32 -1.442695, %v482_v41 }
  0xf1   : > { %726 = vpow2.f32 %v670_v42 }
  0xfe   : > { %v727_v43 = vpop.eup %726 }
  0xff   : > { %v486_v44 = vadd.f32 1.0, %v727_v43 }
 0x101   : > { %728 = vrcp.f32 %v486_v44 }
 0x10e   : > { %v729_v45 = vpop.eup %728 }
 0x10f   : > { %v490_v46 = vsub.f32 1.0, %v729_v45  ;;  %489 = vst [vmem:[%s426_s21] sm:$0x1] %v729_v45 }
 0x110   : > { %795 = shalt.err (!%p792_p12)
}
 0x111   : > { %s796_s22 = scalar_lea.hbm %s1095_s24, 16  ;;  %s800_s9 = scalar_lea.hbm %s1176_s8, 32 }
 0x112   : > { %p797_p13 = scmp.ne.s32.totalorder %s1095_s24, %s796_s22  ;;  %p801_p11 = scmp.lt.s32.totalorder %s1095_s24, %s1176_s8 }
 0x113   : > { %p802_p0 = scmp.lt.s32.totalorder %s800_s9, %s796_s22 }
 0x114   : > { %p798_p9 = pnand %p797_p13, %p1190_p1 }
 0x115   : > { %p803_p5 = por %p802_p0, %p801_p11 }
 0x116   : > { %p799_p10 = pneg %p798_p9 }
 0x118   : > { %p804_p6 = pnand %p803_p5, %p799_p10 }
 0x11a   : > { %807 = shalt.err (!%p804_p6)
}
 0x11b   : > { %680 = dma.vmem_to_hbm [thread:$0]  (%p1190_p1), %s1097_s23, 16, %s1095_s24, %s497_s17   ;;  %491 = vst [vmem:[%s420_s11] sm:$0x1] %v490_v46 }
 0x11c   : > { %s493_s28 = scalar_lea.sflag [#allocation5], %s1061_s16  ;;  %s808_s26 = scalar_lea.vmem %s1104_s13, 16 }
 0x11d   : > { %p809_p2 = scmp.ne.s32.totalorder %s1104_s13, %s808_s26  ;;  %s886_s15 = smov [#allocation9]  }
 0x11e   : > { %s812_s20 = sshll.u32 %s886_s15, 4  ;;  %s813_s20 = int_to_ptr.vmem [resolvable:$false] %s812_s20 }
 0x11f   : > { %p810_p3 = pnand %p809_p2, %p1190_p1  ;;  %s814_s22 = scalar_lea.vmem %s813_s20, 32 }
 0x120   : > { %p815_p7 = scmp.lt.s32.totalorder %s1104_s13, %s813_s20  ;;  %p816_p8 = scmp.lt.s32.totalorder %s814_s22, %s808_s26 }
 0x121   : > { %p811_p4 = pneg %p810_p3 }
 0x122   : > { %p817_p12 = por %p816_p8, %p815_p7 }
 0x124   : > { %p818_p13 = pnand %p817_p12, %p811_p4 }
 0x126   : > { %821 = shalt.err (!%p818_p13)
}
 0x127   : > { %s822_s23 = scalar_lea.hbm %s1102_s6, 16  ;;  %s826_s24 = scalar_lea.hbm %s1175_s7, 32 }
 0x128   : > { %p823_p9 = scmp.ne.s32.totalorder %s1102_s6, %s822_s23  ;;  %p827_p0 = scmp.lt.s32.totalorder %s1102_s6, %s1175_s7 }
 0x129   : > { %p828_p5 = scmp.lt.s32.totalorder %s826_s24, %s822_s23 }
 0x12a   : > { %p824_p10 = pnand %p823_p9, %p1190_p1 }
 0x12b   : > { %p829_p6 = por %p828_p5, %p827_p0 }
 0x12c   : > { %p825_p11 = pneg %p824_p10 }
 0x12e   : > { %p830_p2 = pnand %p829_p6, %p825_p11 }
 0x130   : > { %833 = shalt.err (!%p830_p2)
}
 0x131   : > { %679 = dma.vmem_to_hbm [thread:$0]  (%p1190_p1), %s1104_s13, 16, %s1102_s6, %s493_s28  }
 0x132 PF: > { %s534_s14 = sand.u32 1, %s868_s29   ;;  %p1191_p3 = scmp.ne.s32.totalorder %s1187_s19, 0 }
 0x133   : > { %p1192_p4 = scmp.ge.s32.totalorder %s880_s10, 2  ;;  %s535_s9 = scalar_lea.sflag [#allocation5], %s534_s14 }
 0x135   : > { %p684_p7 = pnand %p1192_p4, %p1191_p3 }
 0x137   : > { %p685_p8 = pneg %p684_p7 }
 0x139   : > { %859 = dma.done.wait (%p685_p8), %s535_s9, 16  }
 0x13a   : > { %861 = vsyncadd (%p685_p8), %s535_s9, 4294967280  ;;  %s543_s25 = scalar_lea.sflag [#allocation11], %s534_s14 }
 0x13b   : > { %863 = dma.done.wait (%p685_p8), %s543_s25, 16  }
 0x13c   : > { %865 = vsyncadd (%p685_p8), %s543_s25, 4294967280  ;;  %s1193_s18 = sld [smem:[#allocation16_spill]]  ;;  %p29_p1 = scmp.ge.s32.totalorder %s960_s12, 4  }
 0x13d   : > { %s1194_s9 = sld [smem:[#allocation17_spill]]  ;;  %s1195_s29 = smov %s872_s30 }
 0x13e   : > { %s1197_s10 = smov %s960_s12  ;;  %31 = sbr.rel (!%p29_p1) target bundleno = 11 (0xb), region = 169 }
 0x142   : > { %s1196_s30 = smov %s1193_s18 }
 0x143   :  { %547 = vsyncpa [#allocation4], 1 }
 0x144   :  { %549 = vsyncpa [#allocation4 + $0x1], 1 }
 0x145   :  { %550 = vsyncpa [#allocation7], 1 }
 0x146   :  { %552 = vsyncpa [#allocation7 + $0x1], 1 }
 0x147   :  { %553 = vsyncpa [#allocation5], 1 }
 0x148   :  { %555 = vsyncpa [#allocation5 + $0x1], 1 }
 0x149   :  { %556 = vsyncpa [#allocation11], 1 }
 0x14a   :  { %558 = vsyncpa [#allocation11 + $0x1], 1 }

</bundles_post_ra>
